<compile_context>
chip_gen: v6e
topology: v6e:2x2x1
jax: 0.10.0
libtpu: 0.0.40
codegen_flags: <defaults>
</compile_context>

<pallas_src>
import jax
import jax.numpy as jnp
from jax.experimental import pallas as pl
from jax.experimental.pallas import tpu as pltpu


# ----------------------------------------------------------------------------
# Primary path: aliased, touch-only kernel (zero HBM traffic).
# ----------------------------------------------------------------------------
def _touch_kernel(x_ref, o_ref):
    # Output aliases the donated input HBM buffer; the data is already there.
    # touch() establishes the (fake) write dependency so the output is
    # considered produced by this call — no DMA, no vector work.
    del x_ref
    pltpu.touch(o_ref)


def _identity_alias(x: jax.Array) -> jax.Array:
    return pl.pallas_call(
        _touch_kernel,
        out_shape=jax.ShapeDtypeStruct(x.shape, x.dtype),
        in_specs=[pl.BlockSpec(memory_space=pl.ANY)],
        out_specs=pl.BlockSpec(memory_space=pl.ANY),
        input_output_aliases={0: 0},
        compiler_params=pltpu.CompilerParams(has_side_effects=True),
    )(x)


# ----------------------------------------------------------------------------
# Fallback path: lane-dense streaming copy with large (4 MiB) blocks.
# ----------------------------------------------------------------------------
_LANE = 512        # lane-dense last dim (multiple of 128) -> unmasked vst
_TILE_ROWS = 2048  # 2048 x 512 f32 block = 4 MiB; ~16 MiB live when pipelined


def _copy_kernel(x_ref, o_ref):
    o_ref[...] = x_ref[...]


def _identity_streaming(x: jax.Array) -> jax.Array:
    orig_shape = x.shape
    dtype = x.dtype

    flat = x.reshape(-1)
    total = flat.shape[0]
    rows = int(pl.cdiv(total, _LANE))

    if rows <= _TILE_ROWS:
        # Single block covering the whole slab; block == full dims is legal.
        tile_rows = rows
        grid_rows = 1
    else:
        tile_rows = _TILE_ROWS
        grid_rows = int(pl.cdiv(rows, tile_rows))
        rows = grid_rows * tile_rows

    padded_total = rows * _LANE
    if padded_total != total:
        flat = jnp.pad(flat, (0, padded_total - total))
    x2 = flat.reshape(rows, _LANE)

    out2 = pl.pallas_call(
        _copy_kernel,
        out_shape=jax.ShapeDtypeStruct((rows, _LANE), dtype),
        grid=(grid_rows,),
        in_specs=[pl.BlockSpec((tile_rows, _LANE), lambda i: (i, 0))],
        out_specs=pl.BlockSpec((tile_rows, _LANE), lambda i: (i, 0)),
        input_output_aliases={0: 0},
        compiler_params=pltpu.CompilerParams(
            dimension_semantics=("parallel",),
            vmem_limit_bytes=32 * 1024 * 1024,
        ),
    )(x2)

    out_flat = out2.reshape(-1)
    if padded_total != total:
        out_flat = out_flat[:total]
    return out_flat.reshape(orig_shape)


# ----------------------------------------------------------------------------
# Public entry point.
# ----------------------------------------------------------------------------
_ALIAS_PATH_OK = None  # tri-state: None = unverified, True / False = cached


def identity(x: jax.Array) -> jax.Array:
    """Identity forward pass: returns x unchanged (same shape, same dtype)."""
    global _ALIAS_PATH_OK
    if x.size == 0:
        return x

    if _ALIAS_PATH_OK is not False:
        try:
            y = _identity_alias(x)
            if _ALIAS_PATH_OK is None:
                # Verify the fast path once; afterwards dispatch stays async.
                jax.block_until_ready(y)
                _ALIAS_PATH_OK = True
            return y
        except Exception:
            _ALIAS_PATH_OK = False

    return _identity_streaming(x)


if __name__ == "__main__":
    key = jax.random.PRNGKey(0)
    # Small NCHW input consistent with a conv-style network input.
    x = jax.random.normal(key, (2, 4, 16, 16), dtype=jnp.float32)

    y = identity(x)
    jax.block_until_ready(y)

    assert y.shape == x.shape
    assert y.dtype == x.dtype
    assert bool(jnp.array_equal(y, x))

    # Extra sanity check: ragged, non-lane-aligned shape and non-f32 dtype.
    x2 = jax.random.normal(key, (3, 5, 7), dtype=jnp.bfloat16)
    y2 = identity(x2)
    jax.block_until_ready(y2)
    assert y2.shape == x2.shape and y2.dtype == x2.dtype
    assert bool(jnp.array_equal(y2, x2))

    print("KERNEL_OK")
</pallas_src>

<mosaic_0001>
module attributes {stable_mosaic.version = 11 : i64} {
  func.func @_touch_kernel(%arg0: memref<2x4x16x16xf32, #tpu.memory_space<any>>, %arg1: memref<2x4x16x16xf32, #tpu.memory_space<any>>) attributes {dimension_semantics = [], scalar_prefetch = 0 : i64, scratch_operands = 0 : i64, tpu.core_type = #tpu.core_type<tc>} {
    return
  }
}

module attributes {stable_mosaic.version = 11 : i64} {
  func.func @_copy_kernel(%arg0: i32, %arg1: memref<4x512xf32, #tpu.memory_space<vmem>>, %arg2: memref<4x512xf32, #tpu.memory_space<vmem>>) attributes {dimension_semantics = [#tpu.dimension_semantics<parallel>], iteration_bounds = array<i64: 1>, scalar_prefetch = 0 : i64, scratch_operands = 0 : i64, tpu.core_type = #tpu.core_type<tc>, window_params = [{transform_indices = @transform_0, window_bounds = array<i64: 4, 512>}, {transform_indices = @transform_1, window_bounds = array<i64: 4, 512>}]} {
    %c0 = arith.constant 0 : index
    %c0_0 = arith.constant 0 : index
    %0 = vector.load %arg1[%c0, %c0_0] : memref<4x512xf32, #tpu.memory_space<vmem>>, vector<4x512xf32>
    %c0_1 = arith.constant 0 : index
    %c0_2 = arith.constant 0 : index
    %1 = vector.load %arg2[%c0_1, %c0_2] : memref<4x512xf32, #tpu.memory_space<vmem>>, vector<4x512xf32>
    tpu.vector_store %arg2[%c0_1, %c0_2], %0 {strides = array<i32>} : memref<4x512xf32, #tpu.memory_space<vmem>>, vector<4x512xf32>,
    return
  }
  func.func @transform_0(%arg0: i32) -> (i32, i32) {
    %c0_i32 = arith.constant 0 : i32
    %c0_i32_0 = arith.constant 0 : i32
    return %arg0, %c0_i32 : i32, i32
  }
  func.func @transform_1(%arg0: i32) -> (i32, i32) {
    %c0_i32 = arith.constant 0 : i32
    %c0_i32_0 = arith.constant 0 : i32
    return %arg0, %c0_i32 : i32, i32
  }
}

</mosaic_0001>

<bundles_post_ra>
// kernel: tpu_custom_call.1
= control target key start
LH: loop header
LB: loop body
LE: loop exit
PB: predicated region body
PF: predicated region fallthrough
CT: control target
= control target key end

     0   :  { %s16_s0 = inlined_call_operand.hbm [shape: f32[2,4,16,16], index: 0, kind: input, shape index: {}, may-alias: {0,1}]   ;;  %s17_s1 = inlined_call_operand.hbm [shape: f32[2,4,16,16], index: 1, kind: output, shape index: {}, may-alias: {0,1}]  }

// kernel: tpu_custom_call.1
= control target key start
LH: loop header
LB: loop body
LE: loop exit
PB: predicated region body
PF: predicated region fallthrough
CT: control target
= control target key end

     0   :  { %6 = vsyncpa [#allocation3], 0  ;;  %s104_s0 = inlined_call_operand.hbm [shape: f32[4,512], index: 0, kind: input, shape index: {}, may-alias: {0,1}]   ;;  %s105_s1 = inlined_call_operand.hbm [shape: f32[4,512], index: 1, kind: output, shape index: {}, may-alias: {0,1}]  }
   0x1   :  { %7 = vsyncpa [#allocation4], 0  ;;  %s86_s6 = smov [#allocation2]  }
   0x2   :  { %s14_s7 = sshll.u32 %s86_s6, 4  ;;  %s15_s7 = int_to_ptr.vmem [resolvable:$true] %s14_s7 }
   0x3   :  { %s50_s8 = scalar_lea.vmem %s15_s7, 256  ;;  %p55_p1 = scmp.lt.s32.totalorder %s15_s7, %s15_s7 }
   0x4   :  { %p51_p0 = scmp.ne.s32.totalorder %s15_s7, %s50_s8  ;;  %p56_p2 = scmp.lt.s32.totalorder %s50_s8, %s50_s8 }
   0x6   :  { %p57_p3 = por %p56_p2, %p55_p1 }
   0x8   :  { %p58_p4 = pnand %p57_p3, %p51_p0 }
   0xa   :  { %61 = shalt.err (!%p58_p4)
}
   0xb   :  { %17 = dma.hbm_to_vmem [thread:$0]  %s104_s0, 256, %s15_s7, [#allocation3]  }
   0xc   :  { %82 = dma.done.wait [#allocation3], 256  }
   0xd   :  { %83 = vsyncadd [#allocation3], 4294967040  ;;  %s87_s11 = smov [#allocation5]   ;;  %v21_v0 = vld [vmem:[#allocation2] sm:$0xff]  ;;  %v22_v1 = vld [vmem:[#allocation2 + $0x8] sm:$0xff] }
   0xe   :  { %s31_s12 = sshll.u32 %s87_s11, 4  ;;  %23 = vst [vmem:[#allocation5] sm:$0xff] %v21_v0  ;;  %24 = vst [vmem:[#allocation5 + $0x8] sm:$0xff] %v22_v1  ;;  %s32_s12 = int_to_ptr.vmem [resolvable:$true] %s31_s12 }
   0xf   :  { %s62_s13 = scalar_lea.vmem %s32_s12, 256  ;;  %p67_p6 = scmp.lt.s32.totalorder %s32_s12, %s32_s12 }
  0x10   :  { %p63_p5 = scmp.ne.s32.totalorder %s32_s12, %s62_s13  ;;  %p68_p7 = scmp.lt.s32.totalorder %s62_s13, %s62_s13 }
  0x12   :  { %p69_p8 = por %p68_p7, %p67_p6 }
  0x14   :  { %p70_p9 = pnand %p69_p8, %p63_p5 }
  0x16   :  { %73 = shalt.err (!%p70_p9)
}
  0x17   :  { %34 = dma.vmem_to_hbm [thread:$0]  %s32_s12, 256, %s105_s1, [#allocation4]  }
  0x18   :  { %84 = dma.done.wait [#allocation4], 256  }
  0x19   :  { %85 = vsyncadd [#allocation4], 4294967040 }
  0x1a   :  { %38 = vsyncpa [#allocation3], 1 }
  0x1b   :  { %39 = vsyncpa [#allocation4], 1 }

</bundles_post_ra>
